<compile_context>
chip_gen: v6e
topology: v6e:2x2x1
jax: 0.10.0
libtpu: 0.0.40
codegen_flags: <defaults>
</compile_context>

<pallas_src>
import functools

import jax
import jax.numpy as jnp
from jax.experimental import pallas as pl
from jax.experimental.pallas import tpu as pltpu

LN_EPS = 1e-5  # nn.LayerNorm default


def _round_up(x, m):
    return ((x + m - 1) // m) * m


def _vmem_caps():
    """Returns (tile budget, scoped-vmem limit) in bytes for this chip."""
    try:
        cap = int(pltpu.get_tpu_info().vmem_capacity_bytes)
    except Exception:
        cap = 0
    if cap >= 96 * 1024 * 1024:  # v5e / v6e class: 128 MiB per TensorCore
        return 90 * 1024 * 1024, min(100 * 1024 * 1024, (cap * 3) // 4)
    # v7x (64 MiB per TC) or unknown: stay conservative.
    return 40 * 1024 * 1024, 48 * 1024 * 1024


def _pick_tiles(m, in_dim, out_dim, itm_x, itm_w, itm_o, budget):
    """Pick (tm, tn) so the resident working set fits the VMEM budget."""
    in_r = _round_up(in_dim, 128)  # lanes round up to 128 in VMEM anyway

    tm_cap = m if m < 8 else min(1024, (m // 8) * 8)

    def fits(tm, tn):
        tm_r = _round_up(max(tm, 1), 8)
        tn_r = _round_up(tn, 128)
        dbl = 2 * (tm_r * in_r * itm_x + in_r * tn_r * itm_w + tm_r * tn_r * itm_o)
        scratch = tm_r * in_r * itm_w          # cached LN+ReLU activation
        tmps = 3 * tm_r * in_r * 4             # f32 LN temporaries (x, xc, y)
        small = 4 * in_r * 4 + 2 * tn_r * 4    # gamma / beta / bias blocks
        return dbl + scratch + tmps + small <= budget

    def max_tm(tn):
        tm = tm_cap
        while tm > 8 and not fits(tm, tn):
            tm = max(8, ((tm // 2) // 8) * 8)
        return tm if fits(tm, tn) else None

    if out_dim < 128:
        tn_cands = [out_dim]                   # full dim (lane-partial, unavoidable)
    else:
        base = (out_dim // 128) * 128
        tn_cands = []
        # Resident weight (grid[1] == 1 -> fetched once) when its
        # double-buffered footprint is <= 1/4 of the budget.
        if out_dim % 128 == 0 and 2 * in_r * out_dim * itm_w <= budget // 4:
            tn_cands.append(out_dim)
        for c in (512, 256, 384, 128):         # prefer 256-multiples (v6e/v7x MXU)
            if c <= base and c not in tn_cands:
                tn_cands.append(c)

    for tn in tn_cands:
        tm = max_tm(tn)
        if tm is None:
            continue
        if tn > 512 and tm < min(128, tm_cap):
            continue  # a huge resident weight would crush the row tile
        return tm, tn

    return (m if m < 8 else 8), (out_dim if out_dim < 128 else 128)


def dense_layer_kernel(x_ref, gamma_ref, beta_ref, w_ref, b_ref, o_ref, act_ref):
    # LN + ReLU computed once per row tile (j == 0), cached in VMEM scratch
    # and reused for every out-dim tile j > 0.
    @pl.when(pl.program_id(1) == 0)
    def _():
        x = x_ref[...].astype(jnp.float32)
        mean = jnp.mean(x, axis=-1, keepdims=True)
        xc = x - mean
        var = jnp.mean(xc * xc, axis=-1, keepdims=True)  # two-pass: no cancellation
        xn = xc * jax.lax.rsqrt(var + LN_EPS)
        y = xn * gamma_ref[...].astype(jnp.float32) + beta_ref[...].astype(jnp.float32)
        act_ref[...] = jnp.maximum(y, 0.0).astype(act_ref.dtype)

    # Linear: MXU operands in the weight's native dtype, f32 accumulation.
    out = jnp.dot(act_ref[...], w_ref[...], preferred_element_type=jnp.float32)
    out = out + b_ref[...].astype(jnp.float32)
    o_ref[...] = out.astype(o_ref.dtype)


def _dense_layer_2d(x, gamma2, beta2, w_t, bias2):
    m, in_dim = x.shape
    out_dim = w_t.shape[1]
    itm_x = jnp.dtype(x.dtype).itemsize
    itm_w = jnp.dtype(w_t.dtype).itemsize
    itm_o = itm_x

    budget, vmem_limit = _vmem_caps()
    tm, tn = _pick_tiles(m, in_dim, out_dim, itm_x, itm_w, itm_o, budget)

    # Give the two v7x TensorCores something to split if the grid would be a
    # single step (costs one extra ~0.35us grid step on 1-TC chips).
    if pl.cdiv(m, tm) == 1 and pl.cdiv(out_dim, tn) == 1 and m > 8:
        tm = max(8, _round_up(pl.cdiv(m, 2), 8))

    grid = (pl.cdiv(m, tm), pl.cdiv(out_dim, tn))

    # Weight stream: deeper buffering only when out_dim is actually tiled.
    if grid[1] > 1:
        try:
            w_spec = pl.BlockSpec((in_dim, tn), lambda i, j: (0, j),
                                  pipeline_mode=pl.Buffered(3))
        except TypeError:
            w_spec = pl.BlockSpec((in_dim, tn), lambda i, j: (0, j))
    else:
        w_spec = pl.BlockSpec((in_dim, tn), lambda i, j: (0, j))

    w_fetches = 1 if grid[1] == 1 else grid[0] * grid[1]
    cost = pl.CostEstimate(
        flops=2 * m * in_dim * out_dim + 8 * m * in_dim,
        transcendentals=m,  # one rsqrt per row
        bytes_accessed=(m * in_dim + m * out_dim) * itm_x
        + w_fetches * in_dim * tn * itm_w,
    )

    return pl.pallas_call(
        dense_layer_kernel,
        out_shape=jax.ShapeDtypeStruct((m, out_dim), x.dtype),
        grid_spec=pltpu.PrefetchScalarGridSpec(
            num_scalar_prefetch=0,
            grid=grid,
            in_specs=[
                pl.BlockSpec((tm, in_dim), lambda i, j: (i, 0)),
                pl.BlockSpec((1, in_dim), lambda i, j: (0, 0)),
                pl.BlockSpec((1, in_dim), lambda i, j: (0, 0)),
                w_spec,
                pl.BlockSpec((1, tn), lambda i, j: (0, j)),
            ],
            out_specs=pl.BlockSpec((tm, tn), lambda i, j: (i, j)),
            scratch_shapes=[pltpu.VMEM((tm, in_dim), w_t.dtype)],
        ),
        compiler_params=pltpu.CompilerParams(
            # j (out-dim) axis carries the cached activation -> keep sequential.
            dimension_semantics=("parallel", "arbitrary"),
            vmem_limit_bytes=vmem_limit,
        ),
        cost_estimate=cost,
    )(x, gamma2, beta2, w_t, bias2)


def make_dense_layer(gamma, beta, weight, bias, *, weight_dtype=None):
    """Prepare parameters once (weight transpose + optional cast, e.g. to
    jnp.bfloat16 for the MXU) and return a jitted forward: (..., in_dim) ->
    (..., out_dim). This hoists the per-call weight rewrite out of the hot path.
    """
    wd = jnp.dtype(weight_dtype) if weight_dtype is not None else jnp.dtype(weight.dtype)
    if jnp.issubdtype(wd, jnp.integer):
        # TODO(synk): quantized integer weights need scale handling (and v7x MXU has no int path).
        raise ValueError("integer weight dtypes are not supported")
    w_t = jnp.asarray(weight, wd).T  # (in_dim, out_dim), one-time copy
    gamma2 = jnp.asarray(gamma).reshape(1, -1)
    beta2 = jnp.asarray(beta).reshape(1, -1)
    bias2 = jnp.asarray(bias).reshape(1, -1)
    out_dim = w_t.shape[1]

    @jax.jit
    def _fwd(feat, gamma2, beta2, w_t, bias2):
        in_dim = feat.shape[-1]
        lead = feat.shape[:-1]
        x = feat.reshape(-1, in_dim)
        out = _dense_layer_2d(x, gamma2, beta2, w_t, bias2)
        return out.reshape(*lead, out_dim)

    def fwd(feat):
        return _fwd(feat, gamma2, beta2, w_t, bias2)

    return fwd


def dense_layer(feat, gamma, beta, weight, bias):
    """Convenience one-shot API (prefer make_dense_layer for repeated calls)."""
    return make_dense_layer(gamma, beta, weight, bias)(feat)


def reference_dense_layer(feat, gamma, beta, weight, bias):
    x = feat.astype(jnp.float32)
    mean = jnp.mean(x, axis=-1, keepdims=True)
    var = jnp.mean((x - mean) ** 2, axis=-1, keepdims=True)
    xn = (x - mean) / jnp.sqrt(var + LN_EPS)
    y = jnp.maximum(xn * gamma + beta, 0.0)
    return y @ weight.T + bias


if __name__ == "__main__":
    in_dim, out_dim = 32, 32
    batch, nodes = 2, 8

    key = jax.random.PRNGKey(0)
    k_feat, k_w, k_b = jax.random.split(key, 3)

    feat = jax.random.normal(k_feat, (batch, nodes, in_dim), dtype=jnp.float32)

    # nn.LayerNorm init: gamma=1, beta=0
    gamma = jnp.ones((in_dim,), dtype=jnp.float32)
    beta = jnp.zeros((in_dim,), dtype=jnp.float32)

    # nn.Linear init: uniform(-1/sqrt(in_dim), 1/sqrt(in_dim)), deterministic here
    bound = 1.0 / (in_dim ** 0.5)
    weight = jax.random.uniform(k_w, (out_dim, in_dim), jnp.float32, -bound, bound)
    bias = jax.random.uniform(k_b, (out_dim,), jnp.float32, -bound, bound)

    fwd = make_dense_layer(gamma, beta, weight, bias)
    out = jax.block_until_ready(fwd(feat))

    ref = reference_dense_layer(feat, gamma, beta, weight, bias)
    assert out.shape == (batch, nodes, out_dim)
    assert jnp.allclose(out, ref, atol=2e-5, rtol=2e-5), float(jnp.max(jnp.abs(out - ref)))

    print("KERNEL_OK")
</pallas_src>

<mosaic_0001>
module attributes {stable_mosaic.version = 11 : i64} {
  func.func @dense_layer_kernel(%arg0: i32, %arg1: i32, %arg2: memref<8x32xf32, #tpu.memory_space<vmem>>, %arg3: memref<1x32xf32, #tpu.memory_space<vmem>>, %arg4: memref<1x32xf32, #tpu.memory_space<vmem>>, %arg5: memref<32x32xf32, #tpu.memory_space<vmem>>, %arg6: memref<1x32xf32, #tpu.memory_space<vmem>>, %arg7: memref<8x32xf32, #tpu.memory_space<vmem>>, %arg8: memref<8x32xf32, #tpu.memory_space<vmem>>) attributes {dimension_semantics = [#tpu.dimension_semantics<parallel>, #tpu.dimension_semantics<arbitrary>], iteration_bounds = array<i64: 2, 1>, scalar_prefetch = 0 : i64, scratch_operands = 1 : i64, tpu.core_type = #tpu.core_type<tc>, window_params = [{transform_indices = @transform_0, window_bounds = array<i64: 8, 32>}, {pipeline_mode = #tpu.pipeline_mode<synchronous>, transform_indices = @transform_1, window_bounds = array<i64: 1, 32>}, {pipeline_mode = #tpu.pipeline_mode<synchronous>, transform_indices = @transform_2, window_bounds = array<i64: 1, 32>}, {transform_indices = @transform_3, window_bounds = array<i64: 32, 32>}, {transform_indices = @transform_4, window_bounds = array<i64: 1, 32>}, {transform_indices = @transform_5, window_bounds = array<i64: 8, 32>}]} {
    %c0_i32 = arith.constant 0 : i32
    %0 = arith.cmpi eq, %arg1, %c0_i32 : i32
    %1 = arith.extui %0 : i1 to i32
    %c0_i32_0 = arith.constant 0 : i32
    %2 = arith.cmpi ne, %1, %c0_i32_0 : i32
    scf.if %2 {
      %c0_8 = arith.constant 0 : index
      %c0_9 = arith.constant 0 : index
      %10 = vector.load %arg2[%c0_8, %c0_9] : memref<8x32xf32, #tpu.memory_space<vmem>>, vector<8x32xf32>
      %cst_10 = arith.constant dense<0.000000e+00> : vector<8xf32>
      %11 = vector.multi_reduction <add>, %10, %cst_10 [1] : vector<8x32xf32> to vector<8xf32>
      %12 = vector.shape_cast %11 : vector<8xf32> to vector<8x1xf32>
      %cst_11 = arith.constant 3.200000e+01 : f32
      %13 = vector.broadcast %cst_11 : f32 to vector<8x1xf32>
      %14 = arith.divf %12, %13 : vector<8x1xf32>
      %15 = vector.broadcast %14 : vector<8x1xf32> to vector<8x32xf32>
      %16 = arith.subf %10, %15 : vector<8x32xf32>
      %17 = arith.mulf %16, %16 : vector<8x32xf32>
      %cst_12 = arith.constant dense<0.000000e+00> : vector<8xf32>
      %18 = vector.multi_reduction <add>, %17, %cst_12 [1] : vector<8x32xf32> to vector<8xf32>
      %19 = vector.shape_cast %18 : vector<8xf32> to vector<8x1xf32>
      %cst_13 = arith.constant 3.200000e+01 : f32
      %20 = vector.broadcast %cst_13 : f32 to vector<8x1xf32>
      %21 = arith.divf %19, %20 : vector<8x1xf32>
      %cst_14 = arith.constant 9.99999974E-6 : f32
      %22 = vector.broadcast %cst_14 : f32 to vector<8x1xf32>
      %23 = arith.addf %21, %22 : vector<8x1xf32>
      %24 = math.rsqrt %23 : vector<8x1xf32>
      %25 = vector.broadcast %24 : vector<8x1xf32> to vector<8x32xf32>
      %26 = arith.mulf %16, %25 : vector<8x32xf32>
      %c0_15 = arith.constant 0 : index
      %c0_16 = arith.constant 0 : index
      %27 = vector.load %arg3[%c0_15, %c0_16] : memref<1x32xf32, #tpu.memory_space<vmem>>, vector<1x32xf32>
      %28 = vector.broadcast %27 : vector<1x32xf32> to vector<8x32xf32>
      %29 = arith.mulf %26, %28 : vector<8x32xf32>
      %c0_17 = arith.constant 0 : index
      %c0_18 = arith.constant 0 : index
      %30 = vector.load %arg4[%c0_17, %c0_18] : memref<1x32xf32, #tpu.memory_space<vmem>>, vector<1x32xf32>
      %31 = vector.broadcast %30 : vector<1x32xf32> to vector<8x32xf32>
      %32 = arith.addf %29, %31 : vector<8x32xf32>
      %cst_19 = arith.constant 0.000000e+00 : f32
      %33 = vector.broadcast %cst_19 : f32 to vector<8x32xf32>
      %34 = arith.maximumf %32, %33 : vector<8x32xf32>
      %c0_20 = arith.constant 0 : index
      %c0_21 = arith.constant 0 : index
      %35 = vector.load %arg8[%c0_20, %c0_21] : memref<8x32xf32, #tpu.memory_space<vmem>>, vector<8x32xf32>
      tpu.vector_store %arg8[%c0_20, %c0_21], %34 {strides = array<i32>} : memref<8x32xf32, #tpu.memory_space<vmem>>, vector<8x32xf32>,
    } else {
    }
    %c0 = arith.constant 0 : index
    %c0_1 = arith.constant 0 : index
    %3 = vector.load %arg8[%c0, %c0_1] : memref<8x32xf32, #tpu.memory_space<vmem>>, vector<8x32xf32>
    %c0_2 = arith.constant 0 : index
    %c0_3 = arith.constant 0 : index
    %4 = vector.load %arg5[%c0_2, %c0_3] : memref<32x32xf32, #tpu.memory_space<vmem>>, vector<32x32xf32>
    %cst = arith.constant dense<0.000000e+00> : vector<8x32xf32>
    %5 = tpu.matmul %3, %4, %cst {dimension_numbers = #tpu.dot_dimension_numbers<[1], [0], [0], [1], [0, 0, 1, 1], [], []>} : vector<8x32xf32>, vector<32x32xf32>, vector<8x32xf32> -> vector<8x32xf32>
    %c0_4 = arith.constant 0 : index
    %c0_5 = arith.constant 0 : index
    %6 = vector.load %arg6[%c0_4, %c0_5] : memref<1x32xf32, #tpu.memory_space<vmem>>, vector<1x32xf32>
    %7 = vector.broadcast %6 : vector<1x32xf32> to vector<8x32xf32>
    %8 = arith.addf %5, %7 : vector<8x32xf32>
    %c0_6 = arith.constant 0 : index
    %c0_7 = arith.constant 0 : index
    %9 = vector.load %arg7[%c0_6, %c0_7] : memref<8x32xf32, #tpu.memory_space<vmem>>, vector<8x32xf32>
    tpu.vector_store %arg7[%c0_6, %c0_7], %8 {strides = array<i32>} : memref<8x32xf32, #tpu.memory_space<vmem>>, vector<8x32xf32>,
    return
  }
  func.func @transform_0(%arg0: i32, %arg1: i32) -> (i32, i32) {
    %c0_i32 = arith.constant 0 : i32
    %c0_i32_0 = arith.constant 0 : i32
    return %arg0, %c0_i32 : i32, i32
  }
  func.func @transform_1(%arg0: i32, %arg1: i32) -> (i32, i32) {
    %c0_i32 = arith.constant 0 : i32
    %c0_i32_0 = arith.constant 0 : i32
    %c0_i32_1 = arith.constant 0 : i32
    return %c0_i32, %c0_i32_0 : i32, i32
  }
  func.func @transform_2(%arg0: i32, %arg1: i32) -> (i32, i32) {
    %c0_i32 = arith.constant 0 : i32
    %c0_i32_0 = arith.constant 0 : i32
    %c0_i32_1 = arith.constant 0 : i32
    return %c0_i32, %c0_i32_0 : i32, i32
  }
  func.func @transform_3(%arg0: i32, %arg1: i32) -> (i32, i32) {
    %c0_i32 = arith.constant 0 : i32
    %c0_i32_0 = arith.constant 0 : i32
    return %c0_i32, %arg1 : i32, i32
  }
  func.func @transform_4(%arg0: i32, %arg1: i32) -> (i32, i32) {
    %c0_i32 = arith.constant 0 : i32
    %c0_i32_0 = arith.constant 0 : i32
    return %c0_i32, %arg1 : i32, i32
  }
  func.func @transform_5(%arg0: i32, %arg1: i32) -> (i32, i32) {
    %c0_i32 = arith.constant 0 : i32
    return %arg0, %arg1 : i32, i32
  }
}

</mosaic_0001>

<bundles_post_ra>
// kernel: _fwd.1
= control target key start
LH: loop header
LB: loop body
LE: loop exit
PB: predicated region body
PF: predicated region fallthrough
CT: control target
= control target key end

     0   :  { %s1016_s0 = inlined_call_operand.hbm [shape: f32[16,32], index: 0, kind: input, shape index: {}]   ;;  %s1017_s1 = inlined_call_operand.vmem [shape: f32[1,32], index: 1, kind: input, shape index: {}]   ;;  %s1018_s2 = inlined_call_operand.vmem [shape: f32[1,32], index: 2, kind: input, shape index: {}]   ;;  %s1019_s3 = inlined_call_operand.hbm [shape: f32[32,32], index: 3, kind: input, shape index: {}]   ;;  %s1020_s4 = inlined_call_operand.vmem [shape: f32[1,32], index: 4, kind: input, shape index: {}]   ;;  %s1021_s5 = inlined_call_operand.hbm [shape: f32[16,32], index: 5, kind: output, shape index: {}]  }
   0x1   :  { %1024 = sst [smem:[#allocation13_spill]] %s1019_s3 }
   0x2   :  { %10 = vsyncpa [#allocation4], 0 }
   0x3   :  { %12 = vsyncpa [#allocation4 + $0x1], 0 }
   0x4   :  { %13 = vsyncpa [#allocation7], 0 }
   0x5   :  { %14 = vsyncpa [#allocation5], 0 }
   0x6   :  { %16 = vsyncpa [#allocation5 + $0x1], 0  ;;  %s825_s18 = smov 0   ;;  %s827_s19 = smov 0  }
   0x7   :  { %s829_s20 = smov 0   ;;  %s831_s21 = smov 0  }
   0x8   :  { %s833_s22 = smov 0   ;;  %s835_s23 = smov 0  }
   0x9 LB: > { %s533_s24 = sadd.s32 4294967295, %s786_s23   ;;  %s534_s25 = sadd.s32 4294967294, %s786_s23   ;;  %s786_s23 = sphi %s835_s23, %s22_s23   ;;  %s782_s22 = sphi %s833_s22, %s1044_s22   ;;  %s778_s21 = sphi %s831_s21, %s1043_s21   ;;  %s774_s20 = sphi %s829_s20, %s1042_s20   ;;  %s770_s19 = sphi %s827_s19, %s1041_s19   ;;  %s766_s18 = sphi %s825_s18, %s1040_s18  }
   0xa   : > { %p54_p0 = scmp.ne.s32.totalorder %s770_s19, %s766_s18  ;;  %p859_p1 = scmp.eq.s32.totalorder %s533_s24, 0 }
   0xb   : > { %p863_p2 = scmp.eq.s32.totalorder %s533_s24, 1  ;;  %p180_p3 = scmp.eq.s32.totalorder %s534_s25, 1 }
   0xc   : > { %p869_p4 = por %p859_p1, %p54_p0  ;;  %p535_p5 = scmp.ge.s32.totalorder %s786_s23, 1 }
   0xd   : > { %p874_p6 = por %p180_p3, %p54_p0  ;;  %p187_p7 = scmp.lt.s32.totalorder %s786_s23, 3 }
   0xe   : > { %s1027_s28 = scalar_select %p869_p4, 1, 0 }
   0xf   : > { %s1028_s29 = scalar_select %p874_p6, 1, 0 }
  0x10   : > { %p879_p8 = pnand %p535_p5, %p187_p7  ;;  %s788_s6 = smov [#allocation6]  }
  0x11   : > { %s207_s7 = sshll.u32 %s788_s6, 4  ;;  %s34_s9 = sadd.s32 1, %s782_s22  ;;  %s208_s7 = int_to_ptr.vmem [resolvable:$true] %s207_s7 }
  0x12   : > { %p577_p9 = pneg %p879_p8  ;;  %s659_s10 = scalar_lea.vmem %s208_s7, 512 }
  0x13   : > { %p660_p13 = scmp.ne.s32.totalorder %s208_s7, %s659_s10  ;;  %p667_p5 = scmp.lt.s32.totalorder %s208_s7, %s208_s7 }
  0x14   : > { %p888_p11 = pnand %p577_p9, %p859_p1  ;;  %p668_p7 = scmp.lt.s32.totalorder %s659_s10, %s659_s10 }
  0x16   : > { %p650_p12 = pneg %p888_p11  ;;  %p669_p6 = por %p668_p7, %p667_p5 }
  0x18   : > { %p662_p0 = pnand %p660_p13, %p650_p12 }
  0x1a   : > { %p663_p3 = pneg %p662_p0 }
  0x1c   : > { %p670_p4 = pnand %p669_p6, %p663_p3 }
  0x1e   : > { %673 = shalt.err (!%p670_p4)
}
  0x1f   : > { %s789_s11 = smov 128   ;;  %s790_s12 = smov 8  }
  0x20   : > { %s1031_s3 = sld [smem:[#allocation13_spill]]  ;;  %p36_p6 = scmp.ge.s32.totalorder %s34_s9, 2 }
  0x21   : > { %s41_s15 = sadd.s32 1, %s774_s20  ;;  %p48_p4 = scmp.ne.s32.totalorder %s774_s20, %s770_s19 }
  0x22   : > { %p49_p9 = scmp.eq.s32.totalorder %s786_s23, 0  ;;  %s1046_s9 = smov (%p36_p6, %s34_s9), 0 }
  0x23   : > { %1032 = sst [smem:[#allocation12_spill]] %s1046_s9  ;;  %p912_p13 = por %p863_p2, %p48_p4 }
  0x24   : > { %p906_p12 = por %p49_p9, %p48_p4  ;;  %s38_s24 = ssub.s32 %s782_s22, %s1046_s9 }
  0x25   : > { %p590_p0 = scmp.lt.s32.totalorder %s786_s23, 2  ;;  %s227_s25 = sand.u32 1, %s774_s20  }
  0x26   : > { %580 = dma.hbm_to_vmem [thread:$0]  (!%p888_p11), %s1031_s3, 512, %s208_s7, [#allocation7], %s789_s11, %s789_s11, %s790_s12  }
  0x27   : > { %p39_p11 = scmp.eq.s32.totalorder %s38_s24, 0  ;;  %s539_s6 = sshll.u32 %s227_s25, 3 }
  0x28   : > { %s540_s8 = sshll.u32 %s782_s22, 7  ;;  %s231_s13 = scalar_lea.vmem [#allocation3], %s539_s6 }
  0x29   : > { %s921_s7 = scalar_select %p39_p11, %s774_s20, %s41_s15  }
  0x2a   : > { %s236_s12 = scalar_lea.hbm %s1016_s0, %s540_s8  ;;  %s238_s14 = sshll.u32 %s231_s13, 4  ;;  %s239_s14 = int_to_ptr.vmem [resolvable:$true] %s238_s14 }
  0x2b   : > { %p929_p2 = pnand %p590_p0, %p906_p12  ;;  %s228_s3 = scalar_lea.sflag [#allocation4], %s227_s25 }
  0x2c   : > { %s687_s24 = scalar_lea.vmem %s239_s14, 128  ;;  %s791_s15 = smov [#allocation3]  }
  0x2d   : > { %p676_p3 = pneg %p929_p2  ;;  %p688_p5 = scmp.ne.s32.totalorder %s239_s14, %s687_s24 }
  0x2e   : > { %s692_s9 = sshll.u32 %s791_s15, 4  ;;  %s693_s9 = int_to_ptr.vmem [resolvable:$false] %s692_s9 }
  0x2f   : > { %p690_p7 = pnand %p688_p5, %p676_p3  ;;  %s694_s8 = scalar_lea.vmem %s693_s9, 256 }
  0x30   : > { %p695_p4 = scmp.lt.s32.totalorder %s239_s14, %s693_s9  ;;  %p696_p9 = scmp.lt.s32.totalorder %s694_s8, %s687_s24 }
  0x31   : > { %p691_p6 = pneg %p690_p7 }
  0x32   : > { %p697_p11 = por %p696_p9, %p695_p4 }
  0x34   : > { %p698_p10 = pnand %p697_p11, %p691_p6 }
  0x36   : > { %701 = shalt.err (!%p698_p10)
}
  0x37   : > { %584 = dma.hbm_to_vmem [thread:$0]  (!%p929_p2), %s236_s12, 128, %s239_s14, %s228_s3  }
  0x38   : > { %247 = sbr.rel (%p879_p8) target bundleno = 591 (0x24f), region = 40  ;;  %s940_s16 = sand.u32 (!%p879_p8), 1, %s770_s19  }
  0x39   : > { %s542_s25 = sshll.u32 (!%p879_p8), %s940_s16, 3  ;;  %s250_s6 = scalar_lea.sflag (!%p879_p8), [#allocation4], %s940_s16 }
  0x3a   : > { %s253_s9 = scalar_lea.vmem (!%p879_p8), [#allocation3], %s542_s25  ;;  %p1036_p12 = scmp.ne.s32.totalorder (!%p879_p8), %s1027_s28, 0 }
  0x3d   : > { %753 = dma.done.wait (%p1036_p12), %s250_s6, 128  }
  0x3e   : > { %755 = vsyncadd (%p1036_p12), %s250_s6, 4294967168 }
  0x3f   : > { %757 = dma.done.wait (%p859_p1), [#allocation7], 512  }
  0x40   : > { %759 = vsyncadd (%p859_p1), [#allocation7], 4294966784  ;;  %vm295_vm0 = vcmask 261120   ;;  %v294_v0 = vld [vmem:[%s253_s9] sm:$0xff]  ;;  %v792_v7 = vmov 0.0   ;;  %vm793_vm1 = vmmov 0  }
  0x41   : > { %v296_v1 = vsel %vm295_vm0, %v294_v0, 0.0  ;;  %558 = vmatprep.subr.mxu0 %v792_v7  ;;  %v332_v8 = vld [vmem:[#allocation6 + $0x18] sm:$0xff]  ;;  %v331_v9 = vld [vmem:[#allocation6 + $0x10] sm:$0xff]  ;;  %566 = vmatprep.mubr.msk.f32.mxu0 %vm793_vm1, %v792_v7  ;;  %v330_v10 = vld [vmem:[#allocation6 + $0x8] sm:$0xff]  ;;  %s550_s12 = sshll.u32 %s778_s21, 7  ;;  %s286_s13 = scalar_lea.vmem [#allocation8], %s542_s25 }
  0x42   : > { %297 = vadd.xlane.f32.xlu0 %v296_v1  ;;  %559 = vmatpush3.msra.mxu0 %v332_v8  ;;  %v329_v11 = vld [vmem:[#allocation6] sm:$0xff]  ;;  %v545_v16 = vld [vmem:[%s1017_s1] ss:$0 sm:$0xff]  ;;  %s430_s14 = sshll.u32 %s286_s13, 4  ;;  %s973_s15 = scalar_lea.hbm %s1021_s5, %s550_s12  ;;  %s431_s14 = int_to_ptr.vmem [resolvable:$true] %s430_s14 }
  0x43   : > { %560 = vmatprep.subr.mxu0 %v792_v7  ;;  %v546_v18 = vld [vmem:[%s1018_s2] ss:$0 sm:$0xff]  ;;  %s416_s8 = scalar_lea.sflag [#allocation5], %s940_s16  ;;  %s702_s6 = scalar_lea.vmem %s431_s14, 128 }
  0x44   : > { %561 = vmatpush3.msra.mxu0 %v331_v9  ;;  %v547_v23 = vld [vmem:[%s1020_s4] ss:$0 sm:$0xff]  ;;  %p703_p1 = scmp.ne.s32.totalorder %s431_s14, %s702_s6  ;;  %s794_s21 = smov [#allocation8]  }
  0x45   : > { %562 = vmatprep.subr.mxu0 %v792_v7  ;;  %s706_s25 = sshll.u32 %s794_s21, 4  ;;  %s707_s25 = int_to_ptr.vmem [resolvable:$false] %s706_s25 }
  0x46   : > { %563 = vmatpush3.msra.mxu0 %v330_v10  ;;  %p704_p8 = pnand %p703_p1, %p912_p13  ;;  %s708_s9 = scalar_lea.vmem %s707_s25, 256 }
  0x47   : > { %564 = vmatprep.subr.mxu0 %v792_v7  ;;  %p709_p0 = scmp.lt.s32.totalorder %s431_s14, %s707_s25  ;;  %p710_p2 = scmp.lt.s32.totalorder %s708_s9, %s702_s6 }
  0x48   : > { %565 = vmatpush3.msra.mxu0 %v329_v11  ;;  %p705_p10 = pneg %p704_p8 }
  0x49   : > { %p711_p3 = por %p710_p2, %p709_p0 }
  0x4b   : > { %p712_p5 = pnand %p711_p3, %p705_p10 }
  0xcb   : > { %v298_v2 = vpop.xlane.xlu0 %297 }
  0xcc   : > { %v300_v3 = vmul.f32 0.03125, %v298_v2 }
  0xce   : > { %v301_v4 = vsub.f32 %v294_v0, %v300_v3 }
  0xd0   : > { %v302_v5 = vmul.f32 %v301_v4, %v301_v4 }
  0xd2   : > { %v303_v6 = vsel %vm295_vm0, %v302_v5, 0.0 }
  0xd3   : > { %304 = vadd.xlane.f32.xlu0 %v303_v6 }
 0x15c   : > { %v305_v12 = vpop.xlane.xlu0 %304 }
 0x15d   : > { %v306_v13 = vmul.f32 0.03125, %v305_v12 }
 0x15f   : > { %v307_v14 = vadd.f32 1e-05, %v306_v13 }
 0x161   : > { %646 = vrsqrt.f32 %v307_v14 }
 0x16e   : > { %v647_v15 = vpop.eup %646 }
 0x16f   : > { %v309_v17 = vmul.f32 %v647_v15, %v301_v4 }
 0x171   : > { %v317_v19 = vmul.f32 %v545_v16, %v309_v17 }
 0x173   : > { %v325_v20 = vadd.f32 %v546_v18, %v317_v19 }
 0x175   : > { %v326_v21 = vmax.f32 %v325_v20, 0.0 }
 0x177   : > { %327 = vst.msk [vmem:[#allocation2] sm:$0xff] %vm295_vm0, %v326_v21 }
 0x17e   : > { %v328_v22 = vld [vmem:[#allocation2] sm:$0xff] }
 0x17f   : > { %567 = vmatmul.mubr.msk.f32.vlgmr.msra.gmra.mxu0 %vm295_vm0, %v328_v22 }
 0x23f   : > { %v410_v24 = vpop.f32.mrf.mxu0 }
 0x240   : > { %v411_v25 = vadd.f32 %v547_v23, %v410_v24 }
 0x241   : > { %v568_v26 = vpop.f32.mrf.mxu0 }
 0x242   : > { %414 = vst.msk [vmem:[%s286_s13] sm:$0xff] %vm295_vm0, %v411_v25 }
 0x243   : > { %715 = shalt.err (!%p712_p5)
}
 0x244   : > { %s716_s3 = scalar_lea.hbm %s973_s15, 128  ;;  %s720_s28 = scalar_lea.hbm %s1021_s5, 256 }
 0x245   : > { %p717_p7 = scmp.ne.s32.totalorder %s973_s15, %s716_s3  ;;  %p721_p9 = scmp.lt.s32.totalorder %s973_s15, %s1021_s5 }
 0x246   : > { %p722_p11 = scmp.lt.s32.totalorder %s720_s28, %s716_s3 }
 0x247   : > { %p718_p6 = pnand %p717_p7, %p912_p13 }
 0x248   : > { %p723_p12 = por %p722_p11, %p721_p9 }
 0x249   : > { %p719_p4 = pneg %p718_p6 }
 0x24b   : > { %p724_p1 = pnand %p723_p12, %p719_p4 }
 0x24d   : > { %727 = shalt.err (!%p724_p1)
}
 0x24e   : > { %575 = dma.vmem_to_hbm [thread:$0]  (%p912_p13), %s431_s14, 128, %s973_s15, %s416_s8  }
 0x24f PF: > { %s442_s11 = sand.u32 1, %s766_s18   ;;  %p1037_p8 = scmp.ne.s32.totalorder %s1028_s29, 0 }
 0x250   : > { %p1038_p10 = scmp.ge.s32.totalorder %s786_s23, 2  ;;  %s443_s12 = scalar_lea.sflag [#allocation5], %s442_s11 }
 0x252   : > { %p586_p0 = pnand %p1038_p10, %p1037_p8 }
 0x254   : > { %p587_p2 = pneg %p586_p0 }
 0x256   : > { %761 = dma.done.wait (%p587_p2), %s443_s12, 128  }
 0x257   : > { %763 = vsyncadd (%p587_p2), %s443_s12, 4294967168  ;;  %s22_s23 = sadd.s32 1, %s786_s23   ;;  %s1039_s17 = sld [smem:[#allocation12_spill]] }
 0x258   : > { %p19_p3 = scmp.ge.s32.totalorder %s22_s23, 4   ;;  %s1040_s18 = smov %s770_s19 }
 0x259   : > { %s1041_s19 = smov %s774_s20  ;;  %s1042_s20 = smov %s921_s7 }
 0x25a   : > { %s1043_s21 = smov %s782_s22  ;;  %21 = sbr.rel (!%p19_p3) target bundleno = 9 (0x9), region = 97 }
 0x25d   : > { %s1044_s22 = smov %s1039_s17 }
 0x25f   :  { %448 = vsyncpa [#allocation4], 1 }
 0x260   :  { %450 = vsyncpa [#allocation4 + $0x1], 1 }
 0x261   :  { %451 = vsyncpa [#allocation7], 1 }
 0x262   :  { %452 = vsyncpa [#allocation5], 1 }
 0x263   :  { %454 = vsyncpa [#allocation5 + $0x1], 1 }

</bundles_post_ra>
